<compile_context>
chip_gen: v5e
topology: v5e:2x2
jax: 0.10.0
libtpu: 0.0.40
codegen_flags: <defaults>
</compile_context>

<pallas_src>
import jax
import jax.numpy as jnp
from jax.experimental import pallas as pl
from jax.experimental.pallas import tpu as pltpu


def _round_up(x, m):
    return pl.cdiv(x, m) * m


def _mlp_kernel(c_ref, z_ref, t_ref, w1b_ref, b1_ref, w2_ref, b2_ref,
                w3_ref, b3_ref, w4_ref, b4_ref, out_ref):
    tm = c_ref.shape[0]
    k_cls = t_ref.shape[0]

    # In-kernel one-hot "gather" of the folded embedding table:
    #   onehot(c) @ T  ==  emb_w[c] @ W1[:out_dim]
    cls = c_ref[...]                                               # [tm, 1] int32
    onehot = (cls == jax.lax.broadcasted_iota(jnp.int32, (tm, k_cls), 1)
              ).astype(jnp.float32)                                # [tm, k_cls]

    # Layer 1: Linear(noise_dim + out_dim -> 64) + Tanh (+ Dropout = id)
    h = (jnp.dot(onehot, t_ref[...], preferred_element_type=jnp.float32)
         + jnp.dot(z_ref[...], w1b_ref[...], preferred_element_type=jnp.float32)
         + b1_ref[...])
    h = jnp.tanh(h)

    # Layer 2: Linear(64 -> 128) + Tanh (+ Dropout = id)
    h = jnp.tanh(jnp.dot(h, w2_ref[...],
                         preferred_element_type=jnp.float32) + b2_ref[...])

    # Layer 3: Linear(128 -> 256) + Tanh (+ Dropout = id)
    h = jnp.tanh(jnp.dot(h, w3_ref[...],
                         preferred_element_type=jnp.float32) + b3_ref[...])

    # Output head: Linear(256 -> feat_dim), lane-dense (padded to 128 cols).
    out_ref[...] = (jnp.dot(h, w4_ref[...],
                            preferred_element_type=jnp.float32) + b4_ref[...])


def fedtad_con_generator_forward(z, c, params):
    """z: [N, noise_dim] f32, c: [N] int class ids."""
    emb_w, w1, b1, w2, b2, w3, b3, w4, b4 = params
    n, noise_dim = z.shape
    out_dim = emb_w.shape[0]
    feat_dim = w4.shape[1]

    # ---- fold embedding gather + concat into the first matmul ----
    # z_c @ W1 = emb_w[c] @ W1[:out_dim] + z @ W1[out_dim:]
    w1a = w1[:out_dim]
    w1b = w1[out_dim:]
    t = emb_w @ w1a                                         # [out_dim, 64]
    k_cls = max(8, _round_up(out_dim, 8))                   # sublane-friendly
    t_pad = jnp.zeros((k_cls, t.shape[1]), t.dtype).at[:out_dim].set(t)

    # ---- lane-dense output: pad feat_dim to a multiple of 128 ----
    feat_pad = _round_up(feat_dim, 128)
    w4p = jnp.zeros((w4.shape[0], feat_pad), w4.dtype).at[:, :feat_dim].set(w4)
    b4p = jnp.zeros((1, feat_pad), b4.dtype).at[:, :feat_dim].set(b4)

    # ---- batch tiling ----
    tile_m = min(256, _round_up(n, 8))
    n_pad = _round_up(n, tile_m)
    z_p = jnp.zeros((n_pad, noise_dim), jnp.float32).at[:n].set(z)
    c_p = jnp.zeros((n_pad, 1), jnp.int32).at[:n, 0].set(c.astype(jnp.int32))

    grid = (n_pad // tile_m,)

    def row_spec(shape):
        return pl.BlockSpec(shape, lambda i: (i, 0))

    def const_spec(shape):
        return pl.BlockSpec(shape, lambda i: (0, 0))

    operands = (c_p, z_p, t_pad, w1b, b1, w2, b2, w3, b3, w4p, b4p)
    in_specs = [
        row_spec((tile_m, 1)),            # class ids (per-row)
        row_spec((tile_m, noise_dim)),    # noise (per-row)
        const_spec(t_pad.shape),          # folded embedding table (resident)
        const_spec(w1b.shape),
        const_spec(b1.shape),
        const_spec(w2.shape),
        const_spec(b2.shape),
        const_spec(w3.shape),
        const_spec(b3.shape),
        const_spec(w4p.shape),
        const_spec(b4p.shape),
    ]

    out = pl.pallas_call(
        _mlp_kernel,
        out_shape=jax.ShapeDtypeStruct((n_pad, feat_pad), jnp.float32),
        grid_spec=pltpu.PrefetchScalarGridSpec(
            num_scalar_prefetch=0,
            grid=grid,
            in_specs=in_specs,
            out_specs=row_spec((tile_m, feat_pad)),
        ),
        compiler_params=pltpu.CompilerParams(
            dimension_semantics=("parallel",)),
    )(*operands)

    return out[:n, :feat_dim]


def init_params(key, noise_dim, feat_dim, out_dim):
    """Deterministic synthetic parameters matching the module's shapes."""
    ks = jax.random.split(key, 9)
    dims = [noise_dim + out_dim, 64, 128, 256]

    emb_w = jax.random.normal(ks[0], (out_dim, out_dim), jnp.float32)

    def linear(k, d_in, d_out):
        kw, kb = jax.random.split(k)
        bound = 1.0 / jnp.sqrt(d_in)
        w = jax.random.uniform(kw, (d_in, d_out), jnp.float32, -bound, bound)
        b = jax.random.uniform(kb, (1, d_out), jnp.float32, -bound, bound)
        return w, b

    w1, b1 = linear(ks[1], dims[0], dims[1])
    w2, b2 = linear(ks[2], dims[1], dims[2])
    w3, b3 = linear(ks[3], dims[2], dims[3])
    w4, b4 = linear(ks[4], dims[3], feat_dim)
    return (emb_w, w1, b1, w2, b2, w3, b3, w4, b4)


def reference_forward(z, c, params):
    emb_w, w1, b1, w2, b2, w3, b3, w4, b4 = params
    z_c = jnp.concatenate([emb_w[c], z], axis=-1)
    h = jnp.tanh(z_c @ w1 + b1)
    h = jnp.tanh(h @ w2 + b2)
    h = jnp.tanh(h @ w3 + b3)
    return h @ w4 + b4


if __name__ == "__main__":
    noise_dim, feat_dim, out_dim = 32, 64, 10

    key = jax.random.PRNGKey(0)
    kp, kz, kc, kz2, kc2 = jax.random.split(key, 5)
    params = init_params(kp, noise_dim, feat_dim, out_dim)

    # Small batch (single tile).
    batch = 8
    z = jax.random.normal(kz, (batch, noise_dim), jnp.float32)
    c = jax.random.randint(kc, (batch,), 0, out_dim, jnp.int32)
    out = jax.block_until_ready(fedtad_con_generator_forward(z, c, params))
    ref = reference_forward(z, c, params)
    assert out.shape == (batch, feat_dim)
    assert jnp.allclose(out, ref, atol=2e-4, rtol=2e-4)

    # Larger ragged batch (multiple grid tiles + row padding).
    batch2 = 300
    z2 = jax.random.normal(kz2, (batch2, noise_dim), jnp.float32)
    c2 = jax.random.randint(kc2, (batch2,), 0, out_dim, jnp.int32)
    out2 = jax.block_until_ready(fedtad_con_generator_forward(z2, c2, params))
    ref2 = reference_forward(z2, c2, params)
    assert out2.shape == (batch2, feat_dim)
    assert jnp.allclose(out2, ref2, atol=2e-4, rtol=2e-4)

    print("KERNEL_OK")
</pallas_src>

<mosaic_0001>
module attributes {stable_mosaic.version = 11 : i64} {
  func.func @_mlp_kernel(%arg0: i32, %arg1: memref<8x1xi32, #tpu.memory_space<vmem>>, %arg2: memref<8x32xf32, #tpu.memory_space<vmem>>, %arg3: memref<16x64xf32, #tpu.memory_space<vmem>>, %arg4: memref<32x64xf32, #tpu.memory_space<vmem>>, %arg5: memref<1x64xf32, #tpu.memory_space<vmem>>, %arg6: memref<64x128xf32, #tpu.memory_space<vmem>>, %arg7: memref<1x128xf32, #tpu.memory_space<vmem>>, %arg8: memref<128x256xf32, #tpu.memory_space<vmem>>, %arg9: memref<1x256xf32, #tpu.memory_space<vmem>>, %arg10: memref<256x128xf32, #tpu.memory_space<vmem>>, %arg11: memref<1x128xf32, #tpu.memory_space<vmem>>, %arg12: memref<8x128xf32, #tpu.memory_space<vmem>>) attributes {dimension_semantics = [#tpu.dimension_semantics<parallel>], iteration_bounds = array<i64: 1>, scalar_prefetch = 0 : i64, scratch_operands = 0 : i64, tpu.core_type = #tpu.core_type<tc>, window_params = [{transform_indices = @transform_0, window_bounds = array<i64: 8, 1>}, {transform_indices = @transform_1, window_bounds = array<i64: 8, 32>}, {pipeline_mode = #tpu.pipeline_mode<synchronous>, transform_indices = @transform_2, window_bounds = array<i64: 16, 64>}, {pipeline_mode = #tpu.pipeline_mode<synchronous>, transform_indices = @transform_3, window_bounds = array<i64: 32, 64>}, {pipeline_mode = #tpu.pipeline_mode<synchronous>, transform_indices = @transform_4, window_bounds = array<i64: 1, 64>}, {pipeline_mode = #tpu.pipeline_mode<synchronous>, transform_indices = @transform_5, window_bounds = array<i64: 64, 128>}, {pipeline_mode = #tpu.pipeline_mode<synchronous>, transform_indices = @transform_6, window_bounds = array<i64: 1, 128>}, {pipeline_mode = #tpu.pipeline_mode<synchronous>, transform_indices = @transform_7, window_bounds = array<i64: 128, 256>}, {pipeline_mode = #tpu.pipeline_mode<synchronous>, transform_indices = @transform_8, window_bounds = array<i64: 1, 256>}, {pipeline_mode = #tpu.pipeline_mode<synchronous>, transform_indices = @transform_9, window_bounds = array<i64: 256, 128>}, {pipeline_mode = #tpu.pipeline_mode<synchronous>, transform_indices = @transform_10, window_bounds = array<i64: 1, 128>}, {transform_indices = @transform_11, window_bounds = array<i64: 8, 128>}]} {
    %c0 = arith.constant 0 : index
    %c0_0 = arith.constant 0 : index
    %0 = vector.load %arg1[%c0, %c0_0] : memref<8x1xi32, #tpu.memory_space<vmem>>, vector<8x1xi32>
    %1 = tpu.iota {dimensions = array<i32: 1>} : vector<8x16xi32>
    %2 = vector.broadcast %0 : vector<8x1xi32> to vector<8x16xi32>
    %3 = arith.cmpi eq, %2, %1 : vector<8x16xi32>
    %4 = arith.extui %3 : vector<8x16xi1> to vector<8x16xi32>
    %5 = arith.sitofp %4 : vector<8x16xi32> to vector<8x16xf32>
    %c0_1 = arith.constant 0 : index
    %c0_2 = arith.constant 0 : index
    %6 = vector.load %arg3[%c0_1, %c0_2] : memref<16x64xf32, #tpu.memory_space<vmem>>, vector<16x64xf32>
    %cst = arith.constant dense<0.000000e+00> : vector<8x64xf32>
    %7 = tpu.matmul %5, %6, %cst {dimension_numbers = #tpu.dot_dimension_numbers<[1], [0], [0], [1], [0, 0, 1, 1], [], []>} : vector<8x16xf32>, vector<16x64xf32>, vector<8x64xf32> -> vector<8x64xf32>
    %c0_3 = arith.constant 0 : index
    %c0_4 = arith.constant 0 : index
    %8 = vector.load %arg2[%c0_3, %c0_4] : memref<8x32xf32, #tpu.memory_space<vmem>>, vector<8x32xf32>
    %c0_5 = arith.constant 0 : index
    %c0_6 = arith.constant 0 : index
    %9 = vector.load %arg4[%c0_5, %c0_6] : memref<32x64xf32, #tpu.memory_space<vmem>>, vector<32x64xf32>
    %cst_7 = arith.constant dense<0.000000e+00> : vector<8x64xf32>
    %10 = tpu.matmul %8, %9, %cst_7 {dimension_numbers = #tpu.dot_dimension_numbers<[1], [0], [0], [1], [0, 0, 1, 1], [], []>} : vector<8x32xf32>, vector<32x64xf32>, vector<8x64xf32> -> vector<8x64xf32>
    %11 = arith.addf %7, %10 : vector<8x64xf32>
    %c0_8 = arith.constant 0 : index
    %c0_9 = arith.constant 0 : index
    %12 = vector.load %arg5[%c0_8, %c0_9] : memref<1x64xf32, #tpu.memory_space<vmem>>, vector<1x64xf32>
    %13 = vector.broadcast %12 : vector<1x64xf32> to vector<8x64xf32>
    %14 = arith.addf %11, %13 : vector<8x64xf32>
    %15 = math.tanh %14 : vector<8x64xf32>
    %c0_10 = arith.constant 0 : index
    %c0_11 = arith.constant 0 : index
    %16 = vector.load %arg6[%c0_10, %c0_11] : memref<64x128xf32, #tpu.memory_space<vmem>>, vector<64x128xf32>
    %cst_12 = arith.constant dense<0.000000e+00> : vector<8x128xf32>
    %17 = tpu.matmul %15, %16, %cst_12 {dimension_numbers = #tpu.dot_dimension_numbers<[1], [0], [0], [1], [0, 0, 1, 1], [], []>} : vector<8x64xf32>, vector<64x128xf32>, vector<8x128xf32> -> vector<8x128xf32>
    %c0_13 = arith.constant 0 : index
    %c0_14 = arith.constant 0 : index
    %18 = vector.load %arg7[%c0_13, %c0_14] : memref<1x128xf32, #tpu.memory_space<vmem>>, vector<1x128xf32>
    %19 = vector.broadcast %18 : vector<1x128xf32> to vector<8x128xf32>
    %20 = arith.addf %17, %19 : vector<8x128xf32>
    %21 = math.tanh %20 : vector<8x128xf32>
    %c0_15 = arith.constant 0 : index
    %c0_16 = arith.constant 0 : index
    %22 = vector.load %arg8[%c0_15, %c0_16] : memref<128x256xf32, #tpu.memory_space<vmem>>, vector<128x256xf32>
    %cst_17 = arith.constant dense<0.000000e+00> : vector<8x256xf32>
    %23 = tpu.matmul %21, %22, %cst_17 {dimension_numbers = #tpu.dot_dimension_numbers<[1], [0], [0], [1], [0, 0, 1, 1], [], []>} : vector<8x128xf32>, vector<128x256xf32>, vector<8x256xf32> -> vector<8x256xf32>
    %c0_18 = arith.constant 0 : index
    %c0_19 = arith.constant 0 : index
    %24 = vector.load %arg9[%c0_18, %c0_19] : memref<1x256xf32, #tpu.memory_space<vmem>>, vector<1x256xf32>
    %25 = vector.broadcast %24 : vector<1x256xf32> to vector<8x256xf32>
    %26 = arith.addf %23, %25 : vector<8x256xf32>
    %27 = math.tanh %26 : vector<8x256xf32>
    %c0_20 = arith.constant 0 : index
    %c0_21 = arith.constant 0 : index
    %28 = vector.load %arg10[%c0_20, %c0_21] : memref<256x128xf32, #tpu.memory_space<vmem>>, vector<256x128xf32>
    %cst_22 = arith.constant dense<0.000000e+00> : vector<8x128xf32>
    %29 = tpu.matmul %27, %28, %cst_22 {dimension_numbers = #tpu.dot_dimension_numbers<[1], [0], [0], [1], [0, 0, 1, 1], [], []>} : vector<8x256xf32>, vector<256x128xf32>, vector<8x128xf32> -> vector<8x128xf32>
    %c0_23 = arith.constant 0 : index
    %c0_24 = arith.constant 0 : index
    %30 = vector.load %arg11[%c0_23, %c0_24] : memref<1x128xf32, #tpu.memory_space<vmem>>, vector<1x128xf32>
    %31 = vector.broadcast %30 : vector<1x128xf32> to vector<8x128xf32>
    %32 = arith.addf %29, %31 : vector<8x128xf32>
    %c0_25 = arith.constant 0 : index
    %c0_26 = arith.constant 0 : index
    %33 = vector.load %arg12[%c0_25, %c0_26] : memref<8x128xf32, #tpu.memory_space<vmem>>, vector<8x128xf32>
    tpu.vector_store %arg12[%c0_25, %c0_26], %32 {strides = array<i32>} : memref<8x128xf32, #tpu.memory_space<vmem>>, vector<8x128xf32>,
    return
  }
  func.func @transform_0(%arg0: i32) -> (i32, i32) {
    %c0_i32 = arith.constant 0 : i32
    %c0_i32_0 = arith.constant 0 : i32
    return %arg0, %c0_i32 : i32, i32
  }
  func.func @transform_1(%arg0: i32) -> (i32, i32) {
    %c0_i32 = arith.constant 0 : i32
    %c0_i32_0 = arith.constant 0 : i32
    return %arg0, %c0_i32 : i32, i32
  }
  func.func @transform_2(%arg0: i32) -> (i32, i32) {
    %c0_i32 = arith.constant 0 : i32
    %c0_i32_0 = arith.constant 0 : i32
    %c0_i32_1 = arith.constant 0 : i32
    return %c0_i32, %c0_i32_0 : i32, i32
  }
  func.func @transform_3(%arg0: i32) -> (i32, i32) {
    %c0_i32 = arith.constant 0 : i32
    %c0_i32_0 = arith.constant 0 : i32
    %c0_i32_1 = arith.constant 0 : i32
    return %c0_i32, %c0_i32_0 : i32, i32
  }
  func.func @transform_4(%arg0: i32) -> (i32, i32) {
    %c0_i32 = arith.constant 0 : i32
    %c0_i32_0 = arith.constant 0 : i32
    %c0_i32_1 = arith.constant 0 : i32
    return %c0_i32, %c0_i32_0 : i32, i32
  }
  func.func @transform_5(%arg0: i32) -> (i32, i32) {
    %c0_i32 = arith.constant 0 : i32
    %c0_i32_0 = arith.constant 0 : i32
    %c0_i32_1 = arith.constant 0 : i32
    return %c0_i32, %c0_i32_0 : i32, i32
  }
  func.func @transform_6(%arg0: i32) -> (i32, i32) {
    %c0_i32 = arith.constant 0 : i32
    %c0_i32_0 = arith.constant 0 : i32
    %c0_i32_1 = arith.constant 0 : i32
    return %c0_i32, %c0_i32_0 : i32, i32
  }
  func.func @transform_7(%arg0: i32) -> (i32, i32) {
    %c0_i32 = arith.constant 0 : i32
    %c0_i32_0 = arith.constant 0 : i32
    %c0_i32_1 = arith.constant 0 : i32
    return %c0_i32, %c0_i32_0 : i32, i32
  }
  func.func @transform_8(%arg0: i32) -> (i32, i32) {
    %c0_i32 = arith.constant 0 : i32
    %c0_i32_0 = arith.constant 0 : i32
    %c0_i32_1 = arith.constant 0 : i32
    return %c0_i32, %c0_i32_0 : i32, i32
  }
  func.func @transform_9(%arg0: i32) -> (i32, i32) {
    %c0_i32 = arith.constant 0 : i32
    %c0_i32_0 = arith.constant 0 : i32
    %c0_i32_1 = arith.constant 0 : i32
    return %c0_i32, %c0_i32_0 : i32, i32
  }
  func.func @transform_10(%arg0: i32) -> (i32, i32) {
    %c0_i32 = arith.constant 0 : i32
    %c0_i32_0 = arith.constant 0 : i32
    %c0_i32_1 = arith.constant 0 : i32
    return %c0_i32, %c0_i32_0 : i32, i32
  }
  func.func @transform_11(%arg0: i32) -> (i32, i32) {
    %c0_i32 = arith.constant 0 : i32
    %c0_i32_0 = arith.constant 0 : i32
    return %arg0, %c0_i32 : i32, i32
  }
}

</mosaic_0001>

<bundles_post_ra>
// kernel: tpu_custom_call.1
= control target key start
LH: loop header
LB: loop body
LE: loop exit
PB: predicated region body
PF: predicated region fallthrough
CT: control target
= control target key end

     0   :  { %16 = vsyncpa [#allocation3], 0  ;;  %s700_s0 = inlined_call_operand.vmem [shape: s32[8,1], index: 0, kind: input, shape index: {}]   ;;  %s701_s1 = inlined_call_operand.vmem [shape: f32[8,32], index: 1, kind: input, shape index: {}]   ;;  %s702_s2 = inlined_call_operand.hbm [shape: f32[16,64], index: 2, kind: input, shape index: {}]   ;;  %s703_s3 = inlined_call_operand.hbm [shape: f32[32,64], index: 3, kind: input, shape index: {}]   ;;  %s704_s4 = inlined_call_operand.vmem [shape: f32[1,64], index: 4, kind: input, shape index: {}]   ;;  %s705_s5 = inlined_call_operand.hbm [shape: f32[64,128], index: 5, kind: input, shape index: {}]   ;;  %s706_s6 = inlined_call_operand.vmem [shape: f32[1,128], index: 6, kind: input, shape index: {}]   ;;  %s707_s7 = inlined_call_operand.hbm [shape: f32[128,256], index: 7, kind: input, shape index: {}]   ;;  %s708_s8 = inlined_call_operand.vmem [shape: f32[1,256], index: 8, kind: input, shape index: {}]   ;;  %s709_s9 = inlined_call_operand.hbm [shape: f32[256,128], index: 9, kind: input, shape index: {}]   ;;  %s710_s10 = inlined_call_operand.vmem [shape: f32[1,128], index: 10, kind: input, shape index: {}]   ;;  %s711_s11 = inlined_call_operand.hbm [shape: f32[8,128], index: 11, kind: output, shape index: {}]  }
   0x1   :  { %17 = vsyncpa [#allocation6], 0 }
   0x2   :  { %18 = vsyncpa [#allocation9], 0 }
   0x3   :  { %19 = vsyncpa [#allocation4], 0  ;;  %s41_s19 = sshll.u32 %s703_s3, 4  ;;  %s580_s20 = smov [#allocation5]   ;;  %s42_s19 = int_to_ptr.hbm [resolvable:$true] %s41_s19 }
   0x4   :  { %s43_s21 = sshll.u32 %s580_s20, 4  ;;  %s71_s24 = sshll.u32 %s707_s7, 4  ;;  %s44_s21 = int_to_ptr.vmem [resolvable:$true] %s43_s21  ;;  %s72_s24 = int_to_ptr.hbm [resolvable:$true] %s71_s24 }
   0x5   :  { %s581_s25 = smov 128   ;;  %s582_s26 = smov 8  }
   0x6   :  { %49 = dma.hbm_to_vmem [thread:$0]  %s42_s19, 512, %s44_s21, [#allocation6], %s581_s25, %s581_s25, %s582_s26  }
   0x7   :  { %s583_s27 = smov [#allocation8]   ;;  %s584_s29 = smov 256  }
   0x8   :  { %s73_s28 = sshll.u32 %s583_s27, 4  ;;  %s585_s3 = smov 16   ;;  %s74_s28 = int_to_ptr.vmem [resolvable:$true] %s73_s28 }
   0x9   :  { %79 = dma.hbm_to_vmem [thread:$0]  %s72_s24, 4096, %s74_s28, [#allocation9], %s584_s29, %s584_s29, %s585_s3  }
   0xa   :  { %s28_s13 = sshll.u32 %s702_s2, 4  ;;  %s586_s14 = smov [#allocation2]   ;;  %s29_s13 = int_to_ptr.hbm [resolvable:$true] %s28_s13 }
   0xb   :  { %s30_s7 = sshll.u32 %s586_s14, 4  ;;  %s56_s17 = sshll.u32 %s705_s5, 4  ;;  %s31_s7 = int_to_ptr.vmem [resolvable:$true] %s30_s7  ;;  %s57_s17 = int_to_ptr.hbm [resolvable:$true] %s56_s17 }
   0xc   :  { %36 = dma.hbm_to_vmem [thread:$0]  %s29_s13, 256, %s31_s7, [#allocation3], %s581_s25, %s581_s25, %s582_s26  }
   0xd   :  { %s587_s18 = smov [#allocation7]   ;;  %s86_s22 = sshll.u32 %s709_s9, 4  ;;  %s87_s22 = int_to_ptr.hbm [resolvable:$true] %s86_s22 }
   0xe   :  { %s58_s19 = sshll.u32 %s587_s18, 4  ;;  %s588_s2 = smov [#allocation10]   ;;  %s59_s19 = int_to_ptr.vmem [resolvable:$true] %s58_s19 }
   0xf   :  { %64 = dma.hbm_to_vmem [thread:$0]  %s57_s17, 1024, %s59_s19, [#allocation6], %s581_s25, %s581_s25, %s582_s26  }
  0x10   :  { %s88_s23 = sshll.u32 %s588_s2, 4  ;;  %s89_s23 = int_to_ptr.vmem [resolvable:$true] %s88_s23 }
  0x11   :  { %94 = dma.hbm_to_vmem [thread:$0]  %s87_s22, 4096, %s89_s23, [#allocation9], %s581_s25, %s581_s25, %s582_s26  }
  0x12   :  { %572 = dma.done.wait [#allocation3], 256  }
  0x13   :  { %573 = vsyncadd [#allocation3], 4294967040 }
  0x14   :  { %574 = dma.done.wait [#allocation6], 1536  }
  0x15   :  { %575 = vsyncadd [#allocation6], 4294965760 }
  0x16   :  { %576 = dma.done.wait [#allocation9], 8192  }
  0x17   :  { %577 = vsyncadd [#allocation9], 4294959104  ;;  %v589_v0 = vmov 0   ;;  %v117_v1 = vld [vmem:[%s700_s0] sm:$0xff]  ;;  %v132_v2 = vld [vmem:[#allocation5 + $0x18] sm:$0xff]  ;;  %vm133_vm0 = vcmask 261120   ;;  %v118_v11 = vlaneseq }
  0x18   :  { %416 = vset.pattern.permute.xlu0 %v589_v0  ;;  %v131_v3 = vld [vmem:[#allocation5 + $0x10] sm:$0xff]  ;;  %149 = vmatpush.msra.mxu0 %v132_v2  ;;  %v127_v4 = vld [vmem:[#allocation2 + $0x8] sm:$0xff]  ;;  %v130_v5 = vld [vmem:[#allocation5 + $0x8] sm:$0xff]  ;;  %vm157_vm1 = vcmask 130048   ;;  %v590_v14 = vmov 0.0   ;;  %vm199_vm3 = vcmask 523264  }
  0x19   :  { %121 = vperm.xlu0 %416, %v117_v1   ;;  %175 = vmatpush.msra.mxu1 %v127_v4  ;;  %v129_v6 = vld [vmem:[#allocation5] sm:$0xff]  ;;  %v126_v7 = vld [vmem:[#allocation2] sm:$0xff]  ;;  %v194_v9 = vld [vmem:[#allocation7 + $0x38] sm:$0xff]  ;;  %v119_v12 = vand.u32 127, %v118_v11  ;;  %s591_s3 = smov [#allocation11]   ;;  %s388_s13 = sshll.u32 %s711_s11, 4  ;;  %s389_s13 = int_to_ptr.hbm [resolvable:$true] %s388_s13 }
  0x1a   :  { %150 = vmatpush.msra.mxu0 %v131_v3  ;;  %v128_v8 = vld [vmem:[%s701_s1] sm:$0xff]  ;;  %211 = vmatpush.msra.mxu2 %v194_v9  ;;  %v192_v16 = vld [vmem:[#allocation7 + $0x28] sm:$0xff]  ;;  %v191_v17 = vld [vmem:[#allocation7 + $0x20] sm:$0xff]  ;;  %s386_s30 = sshll.u32 %s591_s3, 4  ;;  %s387_s30 = int_to_ptr.vmem [resolvable:$true] %s386_s30 }
  0x1b   :  { %176 = vmatpush.msra.mxu1 %v126_v7  ;;  %v193_v10 = vld [vmem:[#allocation7 + $0x30] sm:$0xff]  ;;  %v190_v18 = vld [vmem:[#allocation7 + $0x18] sm:$0xff]  ;;  %v188_v20 = vld [vmem:[#allocation7 + $0x8] sm:$0xff] }
  0x1c   :  { %151 = vmatpush.msra.mxu0 %v130_v5  ;;  %212 = vmatpush.msra.mxu2 %v193_v10  ;;  %v189_v19 = vld [vmem:[#allocation7 + $0x10] sm:$0xff]  ;;  %v187_v21 = vld [vmem:[#allocation7] sm:$0xff]  ;;  %v255_v23 = vld [vmem:[#allocation8 + $0xf8] sm:$0xff] }
  0x1d   :  { %v254_v22 = vld [vmem:[#allocation8 + $0xf0] sm:$0xff]  ;;  %v252_v24 = vld [vmem:[#allocation8 + $0xe0] sm:$0xff]  ;;  %282 = vmatpush.msrb.mxu1 %v255_v23  ;;  %v253_v25 = vld [vmem:[#allocation8 + $0xe8] sm:$0xff] }
  0x1e   :  { %152 = vmatpush.msra.mxu0 %v129_v6  ;;  %213 = vmatpush.msra.mxu2 %v192_v16  ;;  %v250_v26 = vld [vmem:[#allocation8 + $0xd0] sm:$0xff]  ;;  %v251_v27 = vld [vmem:[#allocation8 + $0xd8] sm:$0xff]  ;;  %v248_v28 = vld [vmem:[#allocation8 + $0xc0] sm:$0xff] }
  0x1f   :  { %401 = vmatmul.msk.f32.vlgmr.msra.gmra.mxu0 %vm133_vm0, %v128_v8  ;;  %262 = vmatpush.msra.mxu3 %v254_v22  ;;  %v249_v29 = vld [vmem:[#allocation8 + $0xc8] sm:$0xff]  ;;  %v246_v30 = vld [vmem:[#allocation8 + $0xb0] sm:$0xff]  ;;  %v247_v31 = vld [vmem:[#allocation8 + $0xb8] sm:$0xff] }
  0x20   :  { %214 = vmatpush.msra.mxu2 %v191_v17  ;;  %283 = vmatpush.msrb.mxu1 %v253_v25  ;;  %v244_v32 = vld [vmem:[#allocation8 + $0xa0] sm:$0xff]  ;;  %v245_v33 = vld [vmem:[#allocation8 + $0xa8] sm:$0xff]  ;;  %v242_v34 = vld [vmem:[#allocation8 + $0x90] sm:$0xff] }
  0x21   :  { %263 = vmatpush.msra.mxu3 %v252_v24  ;;  %v243_v35 = vld [vmem:[#allocation8 + $0x98] sm:$0xff]  ;;  %v240_v36 = vld [vmem:[#allocation8 + $0x80] sm:$0xff]  ;;  %v241_v37 = vld [vmem:[#allocation8 + $0x88] sm:$0xff] }
  0x22   :  { %215 = vmatpush.msra.mxu2 %v190_v18  ;;  %284 = vmatpush.msrb.mxu1 %v251_v27  ;;  %v238_v38 = vld [vmem:[#allocation8 + $0x70] sm:$0xff]  ;;  %v239_v39 = vld [vmem:[#allocation8 + $0x78] sm:$0xff]  ;;  %v236_v40 = vld [vmem:[#allocation8 + $0x60] sm:$0xff] }
  0x23   :  { %264 = vmatpush.msra.mxu3 %v250_v26  ;;  %v237_v41 = vld [vmem:[#allocation8 + $0x68] sm:$0xff]  ;;  %v234_v43 = vld [vmem:[#allocation8 + $0x50] sm:$0xff]  ;;  %v235_v44 = vld [vmem:[#allocation8 + $0x58] sm:$0xff] }
  0x24   :  { %216 = vmatpush.msra.mxu2 %v189_v19  ;;  %285 = vmatpush.msrb.mxu1 %v249_v29  ;;  %v417_v45 = vld [vmem:[%s704_s4] ss:$0 sm:$0xff]  ;;  %v232_v50 = vld [vmem:[#allocation8 + $0x40] sm:$0xff]  ;;  %v233_v51 = vld [vmem:[#allocation8 + $0x48] sm:$0xff] }
  0x25   :  { %265 = vmatpush.msra.mxu3 %v248_v28  ;;  %v230_v52 = vld [vmem:[#allocation8 + $0x30] sm:$0xff]  ;;  %v231_v53 = vld [vmem:[#allocation8 + $0x38] sm:$0xff]  ;;  %v228_v54 = vld [vmem:[#allocation8 + $0x20] sm:$0xff] }
  0x26   :  { %217 = vmatpush.msra.mxu2 %v188_v20  ;;  %286 = vmatpush.msrb.mxu1 %v247_v31  ;;  %v229_v55 = vld [vmem:[#allocation8 + $0x28] sm:$0xff]  ;;  %v226_v56 = vld [vmem:[#allocation8 + $0x10] sm:$0xff]  ;;  %v227_v57 = vld [vmem:[#allocation8 + $0x18] sm:$0xff] }
  0x27   :  { %266 = vmatpush.msra.mxu3 %v246_v30  ;;  %v224_v58 = vld [vmem:[#allocation8] sm:$0xff]  ;;  %v225_v59 = vld [vmem:[#allocation8 + $0x8] sm:$0xff]  ;;  %v335_v60 = vld [vmem:[#allocation10 + $0xf8] sm:$0xff] }
  0x28   :  { %218 = vmatpush.msra.mxu2 %v187_v21  ;;  %287 = vmatpush.msrb.mxu1 %v245_v33  ;;  %v334_v61 = vld [vmem:[#allocation10 + $0xf0] sm:$0xff]  ;;  %v319_v62 = vld [vmem:[#allocation10 + $0x78] sm:$0xff]  ;;  %v333_v0 = vld [vmem:[#allocation10 + $0xe8] sm:$0xff] }
  0x29   :  { %267 = vmatpush.msra.mxu3 %v244_v32  ;;  %v318_v63 = vld [vmem:[#allocation10 + $0x70] sm:$0xff]  ;;  %340 = vmatpush.msrb.mxu0 %v319_v62  ;;  %v317_v1 = vld [vmem:[#allocation10 + $0x68] sm:$0xff]  ;;  %v332_v2 = vld [vmem:[#allocation10 + $0xe0] sm:$0xff] }
  0x2a   :  { %288 = vmatpush.msrb.mxu1 %v243_v35  ;;  %360 = vmatpush.msrb.mxu2 %v335_v60  ;;  %v316_v3 = vld [vmem:[#allocation10 + $0x60] sm:$0xff]  ;;  %v331_v4 = vld [vmem:[#allocation10 + $0xd8] sm:$0xff]  ;;  %v330_v6 = vld [vmem:[#allocation10 + $0xd0] sm:$0xff] }
  0x2b   :  { %268 = vmatpush.msra.mxu3 %v242_v34  ;;  %341 = vmatpush.msrb.mxu0 %v318_v63  ;;  %v315_v5 = vld [vmem:[#allocation10 + $0x58] sm:$0xff]  ;;  %v314_v7 = vld [vmem:[#allocation10 + $0x50] sm:$0xff]  ;;  %v329_v8 = vld [vmem:[#allocation10 + $0xc8] sm:$0xff] }
  0x2c   :  { %289 = vmatpush.msrb.mxu1 %v241_v37  ;;  %361 = vmatpush.msrb.mxu2 %v334_v61  ;;  %v313_v9 = vld [vmem:[#allocation10 + $0x48] sm:$0xff]  ;;  %v328_v10 = vld [vmem:[#allocation10 + $0xc0] sm:$0xff]  ;;  %v311_v19 = vld [vmem:[#allocation10 + $0x38] sm:$0xff] }
  0x2d   :  { %269 = vmatpush.msra.mxu3 %v240_v36  ;;  %342 = vmatpush.msrb.mxu0 %v317_v1  ;;  %v312_v11 = vld [vmem:[#allocation10 + $0x40] sm:$0xff]  ;;  %v310_v21 = vld [vmem:[#allocation10 + $0x30] sm:$0xff]  ;;  %v323_v22 = vld [vmem:[#allocation10 + $0x98] sm:$0xff] }
  0x2e   :  { %290 = vmatpush.msrb.mxu1 %v239_v39  ;;  %362 = vmatpush.msrb.mxu2 %v333_v0  ;;  %v324_v20 = vld [vmem:[#allocation10 + $0xa0] sm:$0xff]  ;;  %v309_v23 = vld [vmem:[#allocation10 + $0x28] sm:$0xff]  ;;  %v322_v24 = vld [vmem:[#allocation10 + $0x90] sm:$0xff] }
  0x2f   :  { %270 = vmatpush.msra.mxu3 %v238_v38  ;;  %343 = vmatpush.msrb.mxu0 %v316_v3  ;;  %v308_v25 = vld [vmem:[#allocation10 + $0x20] sm:$0xff]  ;;  %v321_v26 = vld [vmem:[#allocation10 + $0x88] sm:$0xff]  ;;  %v307_v27 = vld [vmem:[#allocation10 + $0x18] sm:$0xff] }
  0x30   :  { %291 = vmatpush.msrb.mxu1 %v237_v41  ;;  %363 = vmatpush.msrb.mxu2 %v332_v2  ;;  %v320_v28 = vld [vmem:[#allocation10 + $0x80] sm:$0xff]  ;;  %v306_v29 = vld [vmem:[#allocation10 + $0x10] sm:$0xff]  ;;  %v305_v30 = vld [vmem:[#allocation10 + $0x8] sm:$0xff] }
  0x31   :  { %271 = vmatpush.msra.mxu3 %v236_v40  ;;  %344 = vmatpush.msrb.mxu0 %v315_v5  ;;  %v304_v31 = vld [vmem:[#allocation10] sm:$0xff]  ;;  %v256_v32 = vld [vmem:[%s708_s8] sm:$0x3] }
  0x32   :  { %292 = vmatpush.msrb.mxu1 %v235_v44  ;;  %364 = vmatpush.msrb.mxu2 %v331_v4  ;;  %v259_v33 = vperm.slane %v256_v32, 1  ;;  %v258_v36 = vperm.slane %v256_v32, 0  ;;  %v419_v41 = vld [vmem:[%s710_s10] ss:$0 sm:$0xff] }
  0x33   :  { %272 = vmatpush.msra.mxu3 %v234_v43  ;;  %345 = vmatpush.msrb.mxu0 %v314_v7 }
  0x34   :  { %293 = vmatpush.msrb.mxu1 %v233_v51  ;;  %365 = vmatpush.msrb.mxu2 %v330_v6 }
  0x35   :  { %273 = vmatpush.msra.mxu3 %v232_v50  ;;  %346 = vmatpush.msrb.mxu0 %v313_v9 }
  0x36   :  { %294 = vmatpush.msrb.mxu1 %v231_v53  ;;  %366 = vmatpush.msrb.mxu2 %v329_v8 }
  0x37   :  { %274 = vmatpush.msra.mxu3 %v230_v52  ;;  %347 = vmatpush.msrb.mxu0 %v312_v11 }
  0x38   :  { %295 = vmatpush.msrb.mxu1 %v229_v55  ;;  %367 = vmatpush.msrb.mxu2 %v328_v10 }
  0x39   :  { %275 = vmatpush.msra.mxu3 %v228_v54  ;;  %348 = vmatpush.msrb.mxu0 %v311_v19 }
  0x3a   :  { %296 = vmatpush.msrb.mxu1 %v227_v57 }
  0x3b   :  { %276 = vmatpush.msra.mxu3 %v226_v56  ;;  %349 = vmatpush.msrb.mxu0 %v310_v21 }
  0x3c   :  { %297 = vmatpush.msrb.mxu1 %v225_v59 }
  0x3d   :  { %277 = vmatpush.msra.mxu3 %v224_v58  ;;  %350 = vmatpush.msrb.mxu0 %v309_v23 }
  0x3f   :  { %351 = vmatpush.msrb.mxu0 %v308_v25 }
  0x41   :  { %352 = vmatpush.msrb.mxu0 %v307_v27 }
  0x43   :  { %353 = vmatpush.msrb.mxu0 %v306_v29 }
  0x45   :  { %354 = vmatpush.msrb.mxu0 %v305_v30 }
  0x47   :  { %355 = vmatpush.msrb.mxu0 %v304_v31 }
  0x8b   :  { %v122_v13 = vpop.permute.xlu0 %121 }
  0x8c   :  { %vm123_vm2 = vcmp.eq.s32.totalorder %v122_v13, %v119_v12  ;;  %v327_v12 = vld [vmem:[#allocation10 + $0xb8] sm:$0xff]  ;;  %v326_v13 = vld [vmem:[#allocation10 + $0xb0] sm:$0xff] }
  0x8d   :  { %v400_v15 = vsel %vm123_vm2, 1.0, %v590_v14  ;;  %368 = vmatpush.msrb.mxu2 %v327_v12  ;;  %v325_v14 = vld [vmem:[#allocation10 + $0xa8] sm:$0xff] }
  0x8e   :  { %402 = vmatmul.msk.f32.vlgmr.msra.gmra.mxu1 %vm157_vm1, %v400_v15  ;;  %v418_v15 = vld [vmem:[%s706_s6] ss:$0 sm:$0xff] }
  0x8f   :  { %369 = vmatpush.msrb.mxu2 %v326_v13 }
  0x91   :  { %370 = vmatpush.msrb.mxu2 %v325_v14 }
  0x93   :  { %371 = vmatpush.msrb.mxu2 %v324_v20 }
  0x95   :  { %372 = vmatpush.msrb.mxu2 %v323_v22 }
  0x97   :  { %373 = vmatpush.msrb.mxu2 %v322_v24 }
  0x99   :  { %374 = vmatpush.msrb.mxu2 %v321_v26 }
  0x9b   :  { %375 = vmatpush.msrb.mxu2 %v320_v28 }
  0x9c   :  { %v154_v42 = vpop.f32.mrf.mxu0 }
 0x10b   :  { %v178_v46 = vpop.f32.mrf.mxu1 }
 0x10c   :  { %v179_v47 = vadd.f32 %v178_v46, %v154_v42 }
 0x10e   :  { %v185_v48 = vadd.f32 %v417_v45, %v179_v47 }
 0x110   :  { %420 = vtanh.f32 %v185_v48 }
 0x116   :  { %v421_v49 = vpop.eup %420 }
 0x117   :  { %403 = vmatmul.msk.f32.vlgmr.msra.gmra.mxu2 %vm199_vm3, %v421_v49 }
 0x19a   :  { %v220_v16 = vpop.f32.mrf.mxu2 }
 0x19b   :  { %v221_v17 = vadd.f32 %v418_v15, %v220_v16 }
 0x19d   :  { %422 = vtanh.f32 %v221_v17 }
 0x1a3   :  { %v423_v18 = vpop.eup %422 }
 0x1a4   :  { %278 = vmatmul.f32.vlgmr.msra.gmra.mxu3 %v423_v18  ;;  %298 = vmatmul.f32.vlgmr.msrb.gmra.mxu1 %v423_v18 }
 0x221   :  { %v299_v34 = vpop.f32.mrf.mxu1 }
 0x222   :  { %v300_v35 = vadd.f32 %v299_v34, %v259_v33 }
 0x224   :  { %424 = vtanh.f32 %v300_v35 }
 0x227   :  { %v279_v37 = vpop.f32.mrf.mxu3 }
 0x228   :  { %v280_v38 = vadd.f32 %v279_v37, %v258_v36 }
 0x22a   :  { %v425_v39 = vpop.eup %424  ;;  %426 = vtanh.f32 %v280_v38 }
 0x22b   :  { %376 = vmatmul.f32.vlgmr.msrb.gmra.mxu2 %v425_v39 }
 0x230   :  { %v427_v40 = vpop.eup %426 }
 0x231   :  { %356 = vmatmul.f32.vlgmr.msrb.gmra.mxu0 %v427_v40 }
 0x2ae   :  { %v357_v42 = vpop.f32.mrf.mxu0  ;;  %v377_v44 = vpop.f32.mrf.mxu2 }
 0x2af   :  { %v358_v43 = vadd.f32 %v419_v41, %v357_v42 }
 0x2b1   :  { %v378_v45 = vadd.f32 %v377_v44, %v358_v43 }
 0x2b3   :  { %380 = vst [vmem:[#allocation11] sm:$0xff] %v378_v45 }
 0x2b4   :  { %391 = dma.vmem_to_hbm [thread:$0]  %s387_s30, 128, %s389_s13, [#allocation4]  }
 0x2b5   :  { %578 = dma.done.wait [#allocation4], 128  }
 0x2b6   :  { %579 = vsyncadd [#allocation4], 4294967168 }
 0x2b7   :  { %396 = vsyncpa [#allocation3], 1 }
 0x2b8   :  { %397 = vsyncpa [#allocation6], 1 }
 0x2b9   :  { %398 = vsyncpa [#allocation9], 1 }
 0x2ba   :  { %399 = vsyncpa [#allocation4], 1 }

</bundles_post_ra>
